<compile_context>
chip_gen: v7x
topology: tpu7x:2x2x1
jax: 0.10.0
libtpu: 0.0.40
codegen_flags: <defaults>
</compile_context>

<pallas_src>
import functools

import jax
import jax.numpy as jnp
from jax import lax
from jax.experimental import pallas as pl
from jax.experimental.pallas import tpu as pltpu


def _round_up(x, m):
    return ((x + m - 1) // m) * m


def _ntxent_lse_kernel(z_row_ref, z_col_ref, lse_ref, m_scr, l_scr, *,
                       inv_temp, block_r, block_c, n_real, np_half,
                       mask_pad_cols, col_resident):
    r = pl.program_id(0)
    c = pl.program_id(1)
    NEG = jnp.float32(-1e30)

    # ---- init online-LSE accumulators at the start of each row block ----
    @pl.when(c == 0)
    def _init():
        m_scr[...] = jnp.full_like(m_scr, NEG)
        l_scr[...] = jnp.zeros_like(l_scr)

    zr = z_row_ref[...]
    if col_resident:
        # Whole normalized z lives in VMEM; slice the current column tile.
        start = pl.multiple_of(c * block_c, block_c)
        zc = z_col_ref[pl.ds(start, block_c), :]
    else:
        zc = z_col_ref[...]

    # (block_r, block_c) similarity tile: contract last dims (no transposed
    # copy of zc), f32 accumulation on the MXU, then fold in 1/temperature.
    sim = lax.dot_general(zr, zc, (((1,), (1,)), ((), ())),
                          preferred_element_type=jnp.float32) * inv_temp

    li = lax.broadcasted_iota(jnp.int32, (block_r, 1), 0)
    lj = lax.broadcasted_iota(jnp.int32, (1, block_c), 1)
    row_g = li + r * block_r
    col_g = lj + c * block_c

    # Mask: self column (global diagonal) and zero-padded columns.
    bad = row_g == col_g
    if mask_pad_cols:
        # column index within its view, without integer modulo
        col_local = col_g - jnp.where(col_g >= np_half, np_half, 0)
        bad = bad | (col_local >= n_real)

    sim_m = jnp.where(bad, NEG, sim)

    # ---- online log-sum-exp update ----
    m_prev = m_scr[...]
    m_new = jnp.maximum(m_prev, jnp.max(sim_m, axis=1, keepdims=True))
    # hard-zero masked terms so even a fully-masked tile contributes nothing
    p = jnp.where(bad, 0.0, jnp.exp(sim_m - m_new))
    l_scr[...] = jnp.exp(m_prev - m_new) * l_scr[...] + jnp.sum(
        p, axis=1, keepdims=True)
    m_scr[...] = m_new

    # ---- finalize: per-row logsumexp over j != i ----
    @pl.when(c == pl.num_programs(1) - 1)
    def _fin():
        lse_ref[...] = m_scr[...] + jnp.log(l_scr[...])


def ntxent_loss_pallas(z1, z2, temperature=0.07, *, block_rows=None,
                       block_cols=None, matmul_dtype=jnp.bfloat16,
                       resident_col_bytes=12 * 1024 * 1024,
                       vmem_limit_bytes=48 * 1024 * 1024):
    assert z1.shape == z2.shape and z1.ndim == 2
    n, d = z1.shape
    inv_temp = float(1.0 / temperature)

    # ---- wrapper-side (XLA) prep: normalize once, positives once ----------
    def l2norm(x):
        x = x.astype(jnp.float32)
        nrm = jnp.sqrt(jnp.sum(x * x, axis=1, keepdims=True))
        return x / jnp.maximum(nrm, 1e-12)     # F.normalize eps semantics

    z1n = l2norm(z1)
    z2n = l2norm(z2)
    # Positive logit of row i is <z1n_i, z2n_i>/T for both views.
    pos = jnp.sum(z1n * z2n, axis=1) * inv_temp
    pos = jnp.concatenate([pos, pos])          # (2n,) in f32

    # ---- tile sizing -------------------------------------------------------
    sub = 16 if matmul_dtype == jnp.bfloat16 else 8
    req_r = 256 if block_rows is None else block_rows
    req_c = 256 if block_cols is None else block_cols
    block_r = _round_up(min(max(req_r, sub), _round_up(n, sub)), sub)
    np_half = _round_up(n, block_r)            # per-view rows, tile aligned
    n2p = 2 * np_half                          # total rows == total cols
    # block_c: largest multiple of `sub` that divides n2p, <= requested width.
    block_c = sub
    cand = _round_up(min(max(req_c, sub), n2p), sub)
    while cand >= sub:
        if n2p % cand == 0:
            block_c = cand
            break
        cand -= sub

    dp = _round_up(max(d, 128), 128)           # lane-pad the feature dim

    # ---- pad + stack + cast (zero pads change no norm / dot product) ------
    z1p = jnp.pad(z1n, ((0, np_half - n), (0, dp - d)))
    z2p = jnp.pad(z2n, ((0, np_half - n), (0, dp - d)))
    z = jnp.concatenate([z1p, z2p], axis=0).astype(matmul_dtype)

    num_row_blocks = n2p // block_r            # always even -> 2-TC friendly
    num_col_blocks = n2p // block_c

    col_bytes = n2p * dp * jnp.dtype(matmul_dtype).itemsize
    col_resident = col_bytes <= resident_col_bytes
    if col_resident:
        # Constant block index -> fetched from HBM exactly once, kept in VMEM.
        col_spec = pl.BlockSpec((n2p, dp), lambda r, c: (0, 0))
    else:
        # Streaming fallback; deeper buffering hides refills on the col axis.
        col_spec = pl.BlockSpec((block_c, dp), lambda r, c: (c, 0),
                                pipeline_mode=pl.Buffered(3))

    kernel = functools.partial(
        _ntxent_lse_kernel,
        inv_temp=inv_temp, block_r=block_r, block_c=block_c,
        n_real=n, np_half=np_half, mask_pad_cols=(np_half != n),
        col_resident=col_resident)

    lse = pl.pallas_call(
        kernel,
        out_shape=jax.ShapeDtypeStruct((n2p, 1), jnp.float32),
        grid_spec=pltpu.PrefetchScalarGridSpec(
            num_scalar_prefetch=0,
            grid=(num_row_blocks, num_col_blocks),
            in_specs=[
                # row tile: constant over c -> fetched once per row block
                pl.BlockSpec((block_r, dp), lambda r, c: (r, 0)),
                col_spec,
            ],
            out_specs=pl.BlockSpec((block_r, 1), lambda r, c: (r, 0)),
            scratch_shapes=[
                pltpu.VMEM((block_r, 1), jnp.float32),   # running max m
                pltpu.VMEM((block_r, 1), jnp.float32),   # running sum l
            ],
        ),
        compiler_params=pltpu.CompilerParams(
            dimension_semantics=("parallel", "arbitrary"),
            vmem_limit_bytes=vmem_limit_bytes),
    )(z, z)

    # Mean over the 2N real rows (padded rows are simply excluded here).
    lse_valid = jnp.concatenate([lse[:n, 0], lse[np_half:np_half + n, 0]])
    return jnp.mean(lse_valid - pos)


def ntxent_loss_ref(z1, z2, temperature=0.07):
    # Pure-JAX reference mirroring the PyTorch module semantics.
    def l2norm(x):
        return x / jnp.maximum(jnp.linalg.norm(x, axis=1, keepdims=True), 1e-12)

    z = jnp.concatenate([l2norm(z1), l2norm(z2)], axis=0).astype(jnp.float32)
    n2 = z.shape[0]
    n = n2 // 2
    sim = (z @ z.T) / temperature
    pos_idx = jnp.concatenate([jnp.arange(n) + n, jnp.arange(n)])
    pos = sim[jnp.arange(n2), pos_idx]
    off = jnp.where(jnp.eye(n2, dtype=bool), -jnp.inf, sim)
    lse = jax.scipy.special.logsumexp(off, axis=1)
    return jnp.mean(lse - pos)


if __name__ == "__main__":
    key = jax.random.PRNGKey(0)
    k1, k2, k3, k4, k5, k6 = jax.random.split(key, 6)

    # Case 1: module demo shape (batch 8, hidden 32); default bf16 + resident z.
    z1 = jax.random.normal(k1, (8, 32), dtype=jnp.float32)
    z2 = jax.random.normal(k2, (8, 32), dtype=jnp.float32)
    loss = ntxent_loss_pallas(z1, z2, temperature=0.07)
    jax.block_until_ready(loss)
    ref = ntxent_loss_ref(z1, z2, temperature=0.07)
    assert jnp.allclose(loss, ref, atol=2e-2, rtol=2e-2), (float(loss), float(ref))

    # Case 2: non-tile-aligned N (row/col padding + mask) and a multi-step
    # online-LSE reduction (2x2 grid of 16x16 tiles); bf16 + resident z.
    z1b = jax.random.normal(k3, (12, 48), dtype=jnp.float32)
    z2b = jax.random.normal(k4, (12, 48), dtype=jnp.float32)
    loss_b = ntxent_loss_pallas(z1b, z2b, temperature=0.1,
                                block_rows=16, block_cols=16)
    jax.block_until_ready(loss_b)
    ref_b = ntxent_loss_ref(z1b, z2b, temperature=0.1)
    assert jnp.allclose(loss_b, ref_b, atol=2e-2, rtol=2e-2), (float(loss_b), float(ref_b))

    # Case 3: force the streaming (non-resident) column path with Buffered(3)
    # and the f32 MXU fallback; tight agreement with the f32 reference.
    z1c = jax.random.normal(k5, (40, 64), dtype=jnp.float32)
    z2c = jax.random.normal(k6, (40, 64), dtype=jnp.float32)
    loss_c = ntxent_loss_pallas(z1c, z2c, temperature=0.07, block_rows=16,
                                block_cols=16, matmul_dtype=jnp.float32,
                                resident_col_bytes=0)
    jax.block_until_ready(loss_c)
    ref_c = ntxent_loss_ref(z1c, z2c, temperature=0.07)
    assert jnp.allclose(loss_c, ref_c, atol=1e-4, rtol=1e-4), (float(loss_c), float(ref_c))

    print("KERNEL_OK")
</pallas_src>

<mosaic_0001>
module attributes {stable_mosaic.version = 11 : i64} {
  func.func @_ntxent_lse_kernel(%arg0: i32, %arg1: i32, %arg2: memref<16x128xbf16, #tpu.memory_space<vmem>>, %arg3: memref<32x128xbf16, #tpu.memory_space<vmem>>, %arg4: memref<16x1xf32, #tpu.memory_space<vmem>>, %arg5: memref<16x1xf32, #tpu.memory_space<vmem>>, %arg6: memref<16x1xf32, #tpu.memory_space<vmem>>) attributes {dimension_semantics = [#tpu.dimension_semantics<parallel>, #tpu.dimension_semantics<arbitrary>], iteration_bounds = array<i64: 2, 1>, scalar_prefetch = 0 : i64, scratch_operands = 2 : i64, tpu.core_type = #tpu.core_type<tc>, window_params = [{transform_indices = @transform_0, window_bounds = array<i64: 16, 128>}, {pipeline_mode = #tpu.pipeline_mode<synchronous>, transform_indices = @transform_1, window_bounds = array<i64: 32, 128>}, {transform_indices = @transform_2, window_bounds = array<i64: 16, 1>}]} {
    %c0_i32 = arith.constant 0 : i32
    %0 = arith.cmpi eq, %arg1, %c0_i32 : i32
    %1 = arith.extui %0 : i1 to i32
    %cst = arith.constant -1.000000e+30 : f32
    %c0_i32_0 = arith.constant 0 : i32
    %2 = arith.cmpi ne, %1, %c0_i32_0 : i32
    scf.if %2 {
      %55 = vector.broadcast %cst : f32 to vector<16x1xf32>
      %c0_23 = arith.constant 0 : index
      %c0_24 = arith.constant 0 : index
      %56 = vector.load %arg5[%c0_23, %c0_24] : memref<16x1xf32, #tpu.memory_space<vmem>>, vector<16x1xf32>
      tpu.vector_store %arg5[%c0_23, %c0_24], %55 {strides = array<i32>} : memref<16x1xf32, #tpu.memory_space<vmem>>, vector<16x1xf32>,
      %cst_25 = arith.constant 0.000000e+00 : f32
      %57 = vector.broadcast %cst_25 : f32 to vector<16x1xf32>
      %c0_26 = arith.constant 0 : index
      %c0_27 = arith.constant 0 : index
      %58 = vector.load %arg6[%c0_26, %c0_27] : memref<16x1xf32, #tpu.memory_space<vmem>>, vector<16x1xf32>
      tpu.vector_store %arg6[%c0_26, %c0_27], %57 {strides = array<i32>} : memref<16x1xf32, #tpu.memory_space<vmem>>, vector<16x1xf32>,
    } else {
    }
    %c0 = arith.constant 0 : index
    %c0_1 = arith.constant 0 : index
    %3 = vector.load %arg2[%c0, %c0_1] : memref<16x128xbf16, #tpu.memory_space<vmem>>, vector<16x128xbf16>
    %c32_i32 = arith.constant 32 : i32
    %4 = arith.muli %arg1, %c32_i32 : i32
    %5 = tpu.assume_multiple %4, 32 : i32
    %6 = arith.index_cast %5 : i32 to index
    %c0_2 = arith.constant 0 : index
    %7 = vector.load %arg3[%6, %c0_2] : memref<32x128xbf16, #tpu.memory_space<vmem>>, vector<32x128xbf16>
    %cst_3 = arith.constant dense<0.000000e+00> : vector<16x32xf32>
    %8 = tpu.matmul %3, %7, %cst_3 {dimension_numbers = #tpu.dot_dimension_numbers<[1], [1], [0], [0], [0, 0, 1, 0], [], []>} : vector<16x128xbf16>, vector<32x128xbf16>, vector<16x32xf32> -> vector<16x32xf32>
    %cst_4 = arith.constant 14.2857141 : f32
    %9 = vector.broadcast %cst_4 : f32 to vector<16x32xf32>
    %10 = arith.mulf %8, %9 : vector<16x32xf32>
    %11 = tpu.iota {dimensions = array<i32: 0>} : vector<16x1xi32>
    %12 = tpu.iota {dimensions = array<i32: 1>} : vector<1x32xi32>
    %c16_i32 = arith.constant 16 : i32
    %13 = arith.muli %arg0, %c16_i32 : i32
    %14 = vector.broadcast %13 : i32 to vector<16x1xi32>
    %15 = arith.addi %11, %14 : vector<16x1xi32>
    %c32_i32_5 = arith.constant 32 : i32
    %16 = arith.muli %arg1, %c32_i32_5 : i32
    %17 = vector.broadcast %16 : i32 to vector<1x32xi32>
    %18 = arith.addi %12, %17 : vector<1x32xi32>
    %19 = vector.broadcast %15 : vector<16x1xi32> to vector<16x32xi32>
    %20 = vector.broadcast %18 : vector<1x32xi32> to vector<16x32xi32>
    %21 = arith.cmpi eq, %19, %20 : vector<16x32xi32>
    %c16_i32_6 = arith.constant 16 : i32
    %22 = vector.broadcast %c16_i32_6 : i32 to vector<1x32xi32>
    %23 = arith.cmpi sge, %18, %22 : vector<1x32xi32>
    %c16_i32_7 = arith.constant 16 : i32
    %c0_i32_8 = arith.constant 0 : i32
    %24 = vector.broadcast %c16_i32_7 : i32 to vector<1x32xi32>
    %25 = vector.broadcast %c0_i32_8 : i32 to vector<1x32xi32>
    %26 = arith.select %23, %24, %25 : vector<1x32xi1>, vector<1x32xi32>
    %27 = arith.subi %18, %26 : vector<1x32xi32>
    %c8_i32 = arith.constant 8 : i32
    %28 = vector.broadcast %c8_i32 : i32 to vector<1x32xi32>
    %29 = arith.cmpi sge, %27, %28 : vector<1x32xi32>
    %30 = vector.broadcast %29 : vector<1x32xi1> to vector<16x32xi1>
    %31 = arith.ori %21, %30 : vector<16x32xi1>
    %cst_9 = arith.constant -1.000000e+30 : f32
    %32 = vector.broadcast %cst_9 : f32 to vector<16x32xf32>
    %33 = arith.select %31, %32, %10 : vector<16x32xi1>, vector<16x32xf32>
    %c0_10 = arith.constant 0 : index
    %c0_11 = arith.constant 0 : index
    %34 = vector.load %arg5[%c0_10, %c0_11] : memref<16x1xf32, #tpu.memory_space<vmem>>, vector<16x1xf32>
    %cst_12 = arith.constant dense<0xFF800000> : vector<16xf32>
    %35 = vector.multi_reduction <maximumf>, %33, %cst_12 [1] : vector<16x32xf32> to vector<16xf32>
    %36 = vector.shape_cast %35 : vector<16xf32> to vector<16x1xf32>
    %37 = arith.maximumf %34, %36 : vector<16x1xf32>
    %38 = vector.broadcast %37 : vector<16x1xf32> to vector<16x32xf32>
    %39 = arith.subf %33, %38 : vector<16x32xf32>
    %40 = math.exp %39 : vector<16x32xf32>
    %cst_13 = arith.constant 0.000000e+00 : f32
    %41 = vector.broadcast %cst_13 : f32 to vector<16x32xf32>
    %42 = arith.select %31, %41, %40 : vector<16x32xi1>, vector<16x32xf32>
    %43 = arith.subf %34, %37 : vector<16x1xf32>
    %44 = math.exp %43 : vector<16x1xf32>
    %c0_14 = arith.constant 0 : index
    %c0_15 = arith.constant 0 : index
    %45 = vector.load %arg6[%c0_14, %c0_15] : memref<16x1xf32, #tpu.memory_space<vmem>>, vector<16x1xf32>
    %46 = arith.mulf %44, %45 : vector<16x1xf32>
    %cst_16 = arith.constant dense<0.000000e+00> : vector<16xf32>
    %47 = vector.multi_reduction <add>, %42, %cst_16 [1] : vector<16x32xf32> to vector<16xf32>
    %48 = vector.shape_cast %47 : vector<16xf32> to vector<16x1xf32>
    %49 = arith.addf %46, %48 : vector<16x1xf32>
    %c0_17 = arith.constant 0 : index
    %c0_18 = arith.constant 0 : index
    %50 = vector.load %arg6[%c0_17, %c0_18] : memref<16x1xf32, #tpu.memory_space<vmem>>, vector<16x1xf32>
    tpu.vector_store %arg6[%c0_17, %c0_18], %49 {strides = array<i32>} : memref<16x1xf32, #tpu.memory_space<vmem>>, vector<16x1xf32>,
    %c0_19 = arith.constant 0 : index
    %c0_20 = arith.constant 0 : index
    %51 = vector.load %arg5[%c0_19, %c0_20] : memref<16x1xf32, #tpu.memory_space<vmem>>, vector<16x1xf32>
    tpu.vector_store %arg5[%c0_19, %c0_20], %37 {strides = array<i32>} : memref<16x1xf32, #tpu.memory_space<vmem>>, vector<16x1xf32>,
    %c0_i32_21 = arith.constant 0 : i32
    %52 = arith.cmpi eq, %arg1, %c0_i32_21 : i32
    %53 = arith.extui %52 : i1 to i32
    %c0_i32_22 = arith.constant 0 : i32
    %54 = arith.cmpi ne, %53, %c0_i32_22 : i32
    scf.if %54 {
      %c0_23 = arith.constant 0 : index
      %c0_24 = arith.constant 0 : index
      %55 = vector.load %arg5[%c0_23, %c0_24] : memref<16x1xf32, #tpu.memory_space<vmem>>, vector<16x1xf32>
      %c0_25 = arith.constant 0 : index
      %c0_26 = arith.constant 0 : index
      %56 = vector.load %arg6[%c0_25, %c0_26] : memref<16x1xf32, #tpu.memory_space<vmem>>, vector<16x1xf32>
      %57 = math.log %56 : vector<16x1xf32>
      %58 = arith.addf %55, %57 : vector<16x1xf32>
      %c0_27 = arith.constant 0 : index
      %c0_28 = arith.constant 0 : index
      %59 = vector.load %arg4[%c0_27, %c0_28] : memref<16x1xf32, #tpu.memory_space<vmem>>, vector<16x1xf32>
      tpu.vector_store %arg4[%c0_27, %c0_28], %58 {strides = array<i32>} : memref<16x1xf32, #tpu.memory_space<vmem>>, vector<16x1xf32>,
    } else {
    }
    return
  }
  func.func @transform_0(%arg0: i32, %arg1: i32) -> (i32, i32) {
    %c0_i32 = arith.constant 0 : i32
    %c0_i32_0 = arith.constant 0 : i32
    return %arg0, %c0_i32 : i32, i32
  }
  func.func @transform_1(%arg0: i32, %arg1: i32) -> (i32, i32) {
    %c0_i32 = arith.constant 0 : i32
    %c0_i32_0 = arith.constant 0 : i32
    %c0_i32_1 = arith.constant 0 : i32
    return %c0_i32, %c0_i32_0 : i32, i32
  }
  func.func @transform_2(%arg0: i32, %arg1: i32) -> (i32, i32) {
    %c0_i32 = arith.constant 0 : i32
    %c0_i32_0 = arith.constant 0 : i32
    return %arg0, %c0_i32 : i32, i32
  }
}

</mosaic_0001>

<bundles_post_ra>
// kernel: tpu_custom_call.1
= control target key start
LH: loop header
LB: loop body
LE: loop exit
PB: predicated region body
PF: predicated region fallthrough
CT: control target
= control target key end

     0   :  { %7 = vsyncpa [#allocation5], 0  ;;  %s904_s0 = inlined_call_operand.hbm [shape: bf16[32,128], index: 0, kind: input, shape index: {}]   ;;  %s905_s1 = inlined_call_operand.hbm [shape: bf16[32,128], index: 1, kind: input, shape index: {}]   ;;  %s906_s2 = inlined_call_operand.vmem [shape: f32[32,1], index: 2, kind: output, shape index: {}]  }
   0x1   :  { %9 = vsyncpa [#allocation5 + $0x1], 0 }
   0x2   :  { %10 = vsyncpa [#allocation7], 0  ;;  %s710_s9 = smov 0   ;;  %s712_s10 = smov 0  }
   0x3   :  { %s714_s11 = smov 0   ;;  %s716_s12 = smov 0  }
   0x4   :  { %s718_s13 = smov 0   ;;  %s720_s14 = smov 0  }
   0x5 LB: > { %s453_s15 = sadd.s32 4294967295, %s685_s14   ;;  %p48_p0 = scmp.ne.s32.totalorder %s669_s10, %s665_s9  ;;  %s685_s14 = sphi %s720_s14, %s16_s14   ;;  %s681_s13 = sphi %s718_s13, %s927_s13   ;;  %s677_s12 = sphi %s716_s12, %s926_s12   ;;  %s673_s11 = sphi %s714_s11, %s925_s11   ;;  %s669_s10 = sphi %s712_s10, %s924_s10   ;;  %s665_s9 = sphi %s710_s9, %s923_s9  }
   0x6   : > { %p740_p1 = scmp.eq.s32.totalorder %s453_s15, 0  ;;  %p455_p2 = scmp.ge.s32.totalorder %s685_s14, 1 }
   0x7   : > { %p106_p3 = scmp.lt.s32.totalorder %s685_s14, 3  ;;  %s687_s19 = smov [#allocation6]  }
   0x8   : > { %s911_s16 = scalar_select %p740_p1, 1, 0 }
   0x9   : > { %p748_p4 = por %p740_p1, %p48_p0  ;;  %p752_p5 = pnand %p455_p2, %p106_p3 }
   0xa   : > { %s118_s20 = sshll.u32 %s687_s19, 4  ;;  %s28_s22 = sadd.s32 1, %s681_s13  ;;  %s119_s20 = int_to_ptr.vmem [resolvable:$true] %s118_s20 }
   0xb   : > { %s912_s17 = scalar_select %p748_p4, 1, 0 }
   0xc   : > { %s913_s18 = scalar_select %p752_p5, 1, 0 }
   0xd   : > { %p490_p6 = pneg %p752_p5  ;;  %s573_s25 = scalar_lea.hbm %s905_s1, 256 }
   0xe   : > { %p574_p8 = scmp.ne.s32.totalorder %s905_s1, %s573_s25  ;;  %p580_p12 = scmp.lt.u32.totalorder %s573_s25, %s905_s1 }
   0xf   : > { %p760_p7 = pnand %p490_p6, %p740_p1 }
  0x11   : > { %p575_p9 = pneg %p760_p7 }
  0x13   : > { %p576_p10 = pnand %p575_p9, %p574_p8 }
  0x15   : > { %p577_p11 = pneg %p576_p10 }
  0x17   : > { %p582_p13 = pnand %p580_p12, %p577_p11 }
  0x19   : > { %585 = shalt.err (!%p582_p13)
}
  0x1a   : > { %s586_s30 = scalar_lea.vmem %s119_s20, 256  ;;  %p594_p6 = scmp.lt.s32.totalorder %s119_s20, %s119_s20 }
  0x1b   : > { %p587_p0 = scmp.ne.s32.totalorder %s119_s20, %s586_s30  ;;  %p595_p1 = scmp.lt.s32.totalorder %s586_s30, %s586_s30 }
  0x1d   : > { %p589_p2 = pnand %p587_p0, %p575_p9  ;;  %p596_p4 = por %p595_p1, %p594_p6 }
  0x1f   : > { %p590_p3 = pneg %p589_p2 }
  0x21   : > { %p597_p5 = pnand %p596_p4, %p590_p3 }
  0x23   : > { %600 = shalt.err (!%p597_p5)
}
  0x24   : > { %s688_s3 = smov 64   ;;  %s689_s4 = smov 4  }
  0x25   : > { %493 = dma.hbm_to_vmem [thread:$0]  (!%p760_p7), %s905_s1, 256, %s119_s20, [#allocation7], %s688_s3, %s688_s3, %s689_s4  }
  0x26   : > { %p30_p1 = scmp.ge.s32.totalorder %s28_s22, 2  ;;  %s35_s7 = sadd.s32 1, %s673_s11 }
  0x27   : > { %p42_p4 = scmp.ne.s32.totalorder %s673_s11, %s669_s10  ;;  %p43_p5 = scmp.eq.s32.totalorder %s685_s14, 0 }
  0x28   : > { %s929_s22 = smov (%p30_p1, %s28_s22), 0  ;;  %p499_p9 = scmp.lt.s32.totalorder %s685_s14, 2 }
  0x29   : > { %p44_p8 = por %p43_p5, %p42_p4  ;;  %s32_s8 = ssub.s32 %s681_s13, %s929_s22 }
  0x2a   : > { %s132_s9 = sand.u32 1, %s673_s11   ;;  %p33_p10 = scmp.eq.s32.totalorder %s32_s8, 0 }
  0x2b   : > { %s458_s15 = sshll.u32 %s132_s9, 3  ;;  %s472_s19 = sshll.u32 %s681_s13, 7 }
  0x2c   : > { %s796_s21 = scalar_select %p33_p10, %s673_s11, %s35_s7  }
  0x2d   : > { %s801_s20 = scalar_lea.hbm %s904_s0, %s472_s19  ;;  %s136_s25 = scalar_lea.vmem [#allocation4], %s458_s15 }
  0x2e   : > { %s143_s26 = sshll.u32 %s136_s25, 4  ;;  %p803_p7 = pnand %p499_p9, %p44_p8  ;;  %s807_s26 = int_to_ptr.vmem [resolvable:$true] %s143_s26 }
  0x2f   : > { %s809_s28 = scalar_lea.sflag [#allocation5], %s132_s9  ;;  %s601_s29 = scalar_lea.hbm %s801_s20, 128 }
  0x30   : > { %p602_p11 = scmp.ne.s32.totalorder %s801_s20, %s601_s29  ;;  %p603_p12 = pneg %p803_p7 }
  0x31   : > { %s606_s6 = scalar_lea.hbm %s904_s0, 256  ;;  %p607_p2 = scmp.lt.u32.totalorder %s801_s20, %s904_s0 }
  0x32   : > { %p604_p13 = pnand %p603_p12, %p602_p11  ;;  %p608_p3 = scmp.lt.u32.totalorder %s606_s6, %s601_s29 }
  0x33   : > { %p610_p1 = scmp.lt.u32.totalorder %s601_s29, %s801_s20 }
  0x34   : > { %p605_p0 = pneg %p604_p13  ;;  %p609_p6 = por %p608_p3, %p607_p2 }
  0x36   : > { %p611_p4 = por %p610_p1, %p609_p6 }
  0x38   : > { %p612_p5 = pnand %p611_p4, %p605_p0 }
  0x3a   : > { %615 = shalt.err (!%p612_p5)
}
  0x3b   : > { %s616_s9 = scalar_lea.vmem %s807_s26, 128  ;;  %s690_s15 = smov [#allocation4]  }
  0x3c   : > { %p617_p8 = scmp.ne.s32.totalorder %s807_s26, %s616_s9  ;;  %s621_s19 = sshll.u32 %s690_s15, 4  ;;  %s622_s19 = int_to_ptr.vmem [resolvable:$false] %s621_s19 }
  0x3d   : > { %s623_s23 = scalar_lea.vmem %s622_s19, 256  ;;  %p624_p11 = scmp.lt.s32.totalorder %s807_s26, %s622_s19 }
  0x3e   : > { %p619_p9 = pnand %p617_p8, %p603_p12  ;;  %p625_p13 = scmp.lt.s32.totalorder %s623_s23, %s616_s9 }
  0x40   : > { %p620_p10 = pneg %p619_p9  ;;  %p626_p2 = por %p625_p13, %p624_p11 }
  0x42   : > { %p627_p3 = pnand %p626_p2, %p620_p10 }
  0x44   : > { %630 = shalt.err (!%p627_p3)
}
  0x45   : > { %497 = dma.hbm_to_vmem [thread:$0]  (!%p803_p7), %s801_s20, 128, %s807_s26, %s809_s28, %s688_s3, %s688_s3, %s689_s4  }
  0x46   : > { %p916_p12 = scmp.ne.s32.totalorder %s913_s18, 0 }
  0x47   : > { %s157_s24 = sand.u32 (!%p916_p12), 1, %s669_s10   ;;  %p917_p0 = scmp.ne.s32.totalorder (!%p916_p12), %s912_s17, 0 }
  0x48   : > { %155 = sbr.rel (%p916_p12) target bundleno = 777 (0x309), region = 28  ;;  %s462_s25 = sshll.u32 (!%p916_p12), %s157_s24, 3 }
  0x49   : > { %s158_s29 = scalar_lea.sflag (!%p916_p12), [#allocation5], %s157_s24  ;;  %s161_s30 = scalar_lea.vmem (!%p916_p12), [#allocation4], %s462_s25 }
  0x4f   : > { %656 = dma.done.wait (%p917_p0), %s158_s29, 128  }
  0x50   : > { %658 = vsyncadd (%p917_p0), %s158_s29, 4294967168  ;;  %p918_p6 = scmp.ne.s32.totalorder %s911_s16, 0 }
  0x52   : > { %660 = dma.done.wait (%p918_p6), [#allocation7], 256  }
  0x53   : > { %662 = vsyncadd (%p918_p6), [#allocation7], 4294967040  ;;  %vm198_vm0 = vcmask 7168   ;;  %v691_v0 = vmov 0.0   ;;  %vm692_vm1 = vmmov 0   ;;  %v558_v1 = vld [vmem:[#allocation6] sm:$0xff]   ;;  %v275_v6 = vlaneseq }
  0x54   : > { %201 = vst.msk [vmem:[#allocation3] sm:$0xff] %vm198_vm0, %v691_v0  ;;  %202 = vst.msk [vmem:[#allocation3 + $0x8] sm:$0xff] %vm198_vm0, %v691_v0  ;;  %476 = vmatprep.subr.bf16.mxu0 %v691_v0  ;;  %480 = vmatprep.mubr.msk.bf16.mxu0 %vm692_vm1, %v691_v0  ;;  %v559_v2 = vld [vmem:[#allocation6 + $0x8] sm:$0xff]   ;;  %v560_v3 = vld [vmem:[%s161_s30] sm:$0xff]   ;;  %v693_v4 = vmov 0   ;;  %s469_s16 = sshll.u32 %s677_s12, 4 }
  0x55   : > { %477 = vmatpush3.bf16.xpose.msra.mxu0 %v558_v1  ;;  %556 = vset.pattern.permute.xlu1 %v693_v4  ;;  %v694_v5 = vmov -1e+30   ;;  %v279_v7 = vand.u32 127, %v275_v6  ;;  %v276_v8 = vshrl.u32 %v275_v6, 7  ;;  %v281_v9 = vstv %s469_s16  ;;  %s464_s17 = sshll.u32 %s677_s12, 1 }
  0x56   : > { %478 = vmatprep.subr.bf16.mxu0 %v691_v0  ;;  %557 = vset.pattern.permute.xlu0 %v693_v4  ;;  %199 = vst.msk [vmem:[#allocation2] sm:$0xff] %vm198_vm0, %v694_v5  ;;  %200 = vst.msk [vmem:[#allocation2 + $0x8] sm:$0xff] %vm198_vm0, %v694_v5  ;;  %vm300_vm7 = vcmask 261120   ;;  %p188_p7 = scmp.lt.s32.totalorder %s464_s17, 3 }
  0x57   : > { %vm288_vm2 = vcmp.ge.s32.totalorder %v279_v7, 16  ;;  %v277_v11 = vadd.s32 8, %v276_v8  ;;  %v282_v12 = vadd.s32 %v281_v9, %v276_v8 }
  0x58   : > { %v289_v10 = vsel %vm288_vm2, 16, %v693_v4  ;;  %s931_s17 = smov (!%p188_p7, %s464_s17), 3 }
  0x59   : > { %v290_v13 = vsub.s32 %v279_v7, %v289_v10  ;;  %v283_v14 = vadd.s32 %v281_v9, %v277_v11  ;;  %vm286_vm3 = vcmp.eq.s32.totalorder %v282_v12, %v279_v7  ;;  %s465_s18 = sshll.u32 %s931_s17, 3 }
  0x5a   : > { %s191_s20 = scalar_lea.vmem %s906_s2, %s465_s18 }
  0x5b   : > { %vm291_vm4 = vcmp.ge.s32.totalorder %v290_v13, 8  ;;  %vm287_vm5 = vcmp.eq.s32.totalorder %v283_v14, %v279_v7  ;;  %v333_v50 = vld [vmem:[#allocation3] sm:$0xff]  ;;  %v334_v54 = vld [vmem:[#allocation3 + $0x8] sm:$0xff] }
  0x5c   : > { %vm856_vm6 = vmor %vm286_vm3, %vm291_vm4 }
  0x5d   : > { %479 = vmatpush3.bf16.xpose.msra.mxu0 %v559_v2  ;;  %vm860_vm8 = vmor %vm287_vm5, %vm291_vm4  ;;  %v298_v27 = vld [vmem:[#allocation2] sm:$0xff]  ;;  %v299_v30 = vld [vmem:[#allocation2 + $0x8] sm:$0xff] }
  0x64   : > { %481 = vmatmul.mubr.bf16.vlgmr.msra.gmra.mrb[0].mxu0 %v560_v3 }
 0x137   : > { %v266_v15 = vpop.f32.mrb[0].mxu0 }
 0x138   : > { %v273_v17 = vmul.f32 14.285714, %v266_v15  ;;  %v482_v18 = vpop.f32.mrb[1].mxu0 }
 0x139   : > { %v269_v19 = vpop.f32.mrb[2].mxu0 }
 0x13a   : > { %v274_v21 = vmul.f32 14.285714, %v269_v19  ;;  %v483_v22 = vpop.f32.mrb[3].mxu0  ;;  %v296_v23 = vsel %vm856_vm6, -1e+30, %v273_v17 }
 0x13b   : > { %v301_v24 = vsel %vm300_vm7, %v296_v23, -inf }
 0x13c   : > { %302 = vmax.xlane.f32.xlu0 %v301_v24  ;;  %v297_v25 = vsel %vm860_vm8, -1e+30, %v274_v21 }
 0x13d   : > { %v304_v26 = vsel %vm300_vm7, %v297_v25, -inf }
 0x140   : > { %305 = vmax.xlane.f32.xlu0 %v304_v26 }
 0x1c9   : > { %v303_v28 = vpop.xlane.xlu0 %302 }
 0x1ca   : > { %v307_v29 = vmax.f32 %v298_v27, %v303_v28 }
 0x1cc   : > { %v327_v31 = vsub.f32 %v298_v27, %v307_v29  ;;  %348 = vst.msk [vmem:[#allocation2] sm:$0xff] %vm198_vm0, %v307_v29  ;;  %311 = vperm.xlu1 %556, %v307_v29  }
 0x1cd   : > { %v306_v32 = vpop.xlane.xlu0 %305 }
 0x1ce   : > { %v308_v33 = vmax.f32 %v299_v30, %v306_v32  ;;  %v329_v47 = vmul.f32 1.442695, %v327_v31 }
 0x1d0   : > { %v328_v34 = vsub.f32 %v299_v30, %v308_v33  ;;  %349 = vst.msk [vmem:[#allocation2 + $0x8] sm:$0xff] %vm198_vm0, %v308_v33  ;;  %316 = vperm.xlu1 %556, %v308_v33  }
 0x1d2   : > { %v331_v48 = vmul.f32 1.442695, %v328_v34 }
 0x1d3   : > { %v353_v63 = vld [vmem:[#allocation2] sm:$0xff] }
 0x1d7   : > { %v354_v3 = vld [vmem:[#allocation2 + $0x8] sm:$0xff] }
 0x24b   : > { %v312_v35 = vpop.permute.xlu1 %311 }
 0x24c   : > { %v319_v36 = vsub.f32 %v296_v23, %v312_v35 }
 0x24e   : > { %v321_v37 = vmul.f32 1.442695, %v319_v36 }
 0x24f   : > { %v317_v38 = vpop.permute.xlu1 %316 }
 0x250   : > { %561 = vpow2.f32 %v321_v37  ;;  %v320_v39 = vsub.f32 %v297_v25, %v317_v38 }
 0x252   : > { %v323_v40 = vmul.f32 1.442695, %v320_v39 }
 0x254   : > { %563 = vpow2.f32 %v323_v40 }
 0x255   : > { %565 = vpow2.f32 %v329_v47 }
 0x256   : > { %567 = vpow2.f32 %v331_v48 }
 0x25a   : > { %v562_v41 = vpop.eup %561 }
 0x25b   : > { %v325_v42 = vsel %vm856_vm6, 0.0, %v562_v41 }
 0x25c   : > { %v337_v43 = vsel %vm300_vm7, %v325_v42, 0.0 }
 0x25d   : > { %338 = vadd.xlane.f32.xlu0 %v337_v43 }
 0x25e   : > { %v564_v44 = vpop.eup %563 }
 0x25f   : > { %v326_v45 = vsel %vm860_vm8, 0.0, %v564_v44  ;;  %v566_v49 = vpop.eup %565 }
 0x260   : > { %v340_v46 = vsel %vm300_vm7, %v326_v45, 0.0  ;;  %v335_v51 = vmul.f32 %v566_v49, %v333_v50  ;;  %v568_v52 = vpop.eup %567 }
 0x261   : > { %341 = vadd.xlane.f32.xlu1 %v340_v46  ;;  %v336_v56 = vmul.f32 %v568_v52, %v334_v54 }
 0x2ea   : > { %v339_v53 = vpop.xlane.xlu0 %338 }
 0x2eb   : > { %v343_v55 = vadd.f32 %v339_v53, %v335_v51 }
 0x2ed   : > { %346 = vst.msk [vmem:[#allocation3] sm:$0xff] %vm198_vm0, %v343_v55 }
 0x2ee   : > { %v342_v57 = vpop.xlane.xlu1 %341 }
 0x2ef   : > { %v344_v58 = vadd.f32 %v342_v57, %v336_v56 }
 0x2f1   : > { %347 = vst.msk [vmem:[#allocation3 + $0x8] sm:$0xff] %vm198_vm0, %v344_v58 }
 0x2f4   : > { %v355_v59 = vld [vmem:[#allocation3] sm:$0xff] }
 0x2f5   : > { %569 = vlog2.f32 %v355_v59 }
 0x2f8   : > { %v356_v60 = vld [vmem:[#allocation3 + $0x8] sm:$0xff] }
 0x2f9   : > { %571 = vlog2.f32 %v356_v60 }
 0x2ff   : > { %v570_v61 = vpop.eup %569 }
 0x300   : > { %v358_v62 = vmul.f32 0.6931472, %v570_v61 }
 0x302   : > { %v361_v0 = vadd.f32 %v358_v62, %v353_v63 }
 0x303   : > { %v572_v1 = vpop.eup %571 }
 0x304   : > { %363 = vst.msk [vmem:[%s191_s20] sm:$0xff] %vm198_vm0, %v361_v0  ;;  %v360_v2 = vmul.f32 0.6931472, %v572_v1 }
 0x306   : > { %v362_v4 = vadd.f32 %v360_v2, %v354_v3 }
 0x308   : > { %364 = vst.msk [vmem:[%s191_s20 + $0x8] sm:$0xff] %vm198_vm0, %v362_v4 }
 0x309 PF: > { %s16_s14 = sadd.s32 1, %s685_s14   ;;  %s923_s9 = smov %s669_s10 }
 0x30a   : > { %p13_p1 = scmp.ge.s32.totalorder %s16_s14, 4   ;;  %s924_s10 = smov %s673_s11 }
 0x30b   : > { %s925_s11 = smov %s796_s21  ;;  %s926_s12 = smov %s681_s13 }
 0x30c   : > { %s927_s13 = smov %s929_s22  ;;  %15 = sbr.rel (!%p13_p1) target bundleno = 5 (0x5), region = 81 }
 0x313   :  { %387 = vsyncpa [#allocation5], 1 }
 0x314   :  { %389 = vsyncpa [#allocation5 + $0x1], 1 }
 0x315   :  { %390 = vsyncpa [#allocation7], 1 }

</bundles_post_ra>
